<compile_context>
chip_gen: v7x
topology: tpu7x:2x2x1
jax: 0.10.0
libtpu: 0.0.40
codegen_flags: <defaults>
</compile_context>

<pallas_src>
import math
import functools

import jax
import jax.numpy as jnp
from jax.experimental import pallas as pl
from jax.experimental.pallas import tpu as pltpu


def _round_up(x, m):
    return (x + m - 1) // m * m


def _vmem_capacity_bytes():
    """Best-effort per-core VMEM capacity query; conservative fallback."""
    try:
        info = pltpu.get_tpu_info()
        for name in ("vmem_capacity_bytes", "vmem_size_bytes", "vmem_bytes"):
            cap = getattr(info, name, None)
            if cap:
                return int(cap)
    except Exception:
        pass
    return 64 << 20  # conservative (v7x-sized)


def _ffn_kernel(x_ref, w1_ref, b1_ref, w2_ref, b2_ref, o_ref, *scratch, num_sub, sub_k):
    # x_ref:  (rb, Dp)
    # w1_ref: (Dp, tk)   b1_ref: (1, tk)
    # w2_ref: (tk, Dp)   b2_ref: (1, Dp)
    # o_ref:  (rb, Dp)   scratch: optional (rb, Dp) f32 accumulator (only for non-f32 outputs)
    acc_ref = scratch[0] if scratch else o_ref
    k = pl.program_id(1)

    @pl.when(k == 0)
    def _():
        acc_ref[...] = jnp.zeros_like(acc_ref)

    x = x_ref[...]  # load once; reused by every hidden sub-chunk
    inv_sqrt2 = jnp.float32(1.0 / math.sqrt(2.0))

    # Sub-chunk the hidden tile so matmul2 of chunk j overlaps matmul1 + GELU of chunk j+1.
    for j in range(num_sub):
        s = slice(j * sub_k, (j + 1) * sub_k)

        # Linear 1 (this hidden sub-slice): native-dtype MXU operands, f32 accumulation.
        h = jnp.dot(x, w1_ref[:, s], preferred_element_type=jnp.float32)
        h = h + b1_ref[:, s].astype(jnp.float32)

        # Exact (erf-based) GELU in f32, matching torch.nn.GELU() default.
        g = 0.5 * h * (1.0 + jax.lax.erf(h * inv_sqrt2))

        # Dropout(p=0.0) is the identity -> no-op.

        # Linear 2 partial product, accumulated in f32 (directly into o_ref when it is f32).
        acc_ref[...] += jnp.dot(
            g.astype(w2_ref.dtype), w2_ref[s, :], preferred_element_type=jnp.float32
        )

    @pl.when(k == pl.num_programs(1) - 1)
    def _():
        o_ref[...] = (acc_ref[...] + b2_ref[...].astype(jnp.float32)).astype(o_ref.dtype)


@functools.partial(jax.jit, static_argnames=("row_block", "hidden_block", "compute_dtype"))
def feed_forward(x, w1, b1, w2, b2, *, row_block=None, hidden_block=None, compute_dtype=None):
    """x: (batch, seq, dim); w1: (dim, hidden); b1: (hidden,); w2: (hidden, dim); b2: (dim,)."""
    B, S, D = x.shape
    H = w1.shape[1]
    N = B * S
    out_dtype = x.dtype

    # Optional reduced-precision MXU operands (f32 accumulation retained via preferred_element_type).
    mxu_dtype = jnp.dtype(compute_dtype) if compute_dtype is not None else jnp.dtype(x.dtype)
    w_mxu_dtype = jnp.dtype(compute_dtype) if compute_dtype is not None else jnp.dtype(w1.dtype)

    x_b = mxu_dtype.itemsize
    w_b = w_mxu_dtype.itemsize
    o_b = jnp.dtype(out_dtype).itemsize

    vmem_cap = _vmem_capacity_bytes()
    use_acc_scratch = jnp.dtype(out_dtype) != jnp.dtype(jnp.float32)

    # --- Tile sizing: per-generation targets, then shrink to fit VMEM. ---
    # Target 1024 rows (above the compute/BW knee on v5e/v6e/v7x); tk=512 on 128 MiB parts,
    # tk=256 on 64 MiB parts (v7x) to halve per-step weight VMEM at equal HBM traffic.
    rb_target = row_block if row_block is not None else 1024
    tk_target = hidden_block if hidden_block is not None else (256 if vmem_cap <= (72 << 20) else 512)

    Dp = _round_up(D, 128)
    tk = _round_up(min(tk_target, _round_up(H, 128)), 128)

    if N <= rb_target:
        rb = _round_up(max(N, 8), 8)          # single row tile, no wasted padded rows
    else:
        rb = _round_up(rb_target, 128)

    def budget(rb_, tk_):
        return (
            2 * rb_ * Dp * x_b                  # x tiles (double-buffered)
            + 2 * (Dp * tk_ + tk_) * w_b        # w1 + b1 tiles
            + 2 * (tk_ * Dp + Dp) * w_b         # w2 + b2 tiles
            + 2 * rb_ * Dp * o_b                # output tiles
            + (rb_ * Dp * 4 if use_acc_scratch else 0)  # f32 accumulator scratch
            + 2 * rb_ * min(tk_, 256) * 4       # h / g f32 intermediates headroom
        )

    budget_cap = max(int(0.80 * vmem_cap), 16 << 20)
    while budget(rb, tk) > budget_cap:
        if tk > 256:
            tk = max(256, _round_up(tk // 2, 128))
        elif rb > 256:
            rb = max(256, _round_up(rb // 2, 128))
        elif tk > 128:
            tk = 128
        elif rb > 8:
            rb = max(8, _round_up(rb // 2, 8))
        else:
            break

    Np = _round_up(N, rb)
    Hp = _round_up(H, tk)

    # Hidden sub-chunking inside the kernel (overlap matmul2(j) with matmul1+GELU(j+1)).
    if tk >= 512 and tk % 256 == 0:
        sub_k = 256
    else:
        sub_k = tk
    num_sub = tk // sub_k

    # --- Operand preparation (casts / pads only when needed). ---
    # Zero-padding keeps the math exact:
    #   - padded D rows of w1 / cols of x contribute 0 to h
    #   - padded H cols of w1 and b1 give h=0 -> GELU(0)=0 -> no contribution through w2
    #   - padded output cols of w2 / b2 are 0 and sliced off
    x2d = x.reshape(N, D)
    w1c, w2c = w1, w2
    if compute_dtype is not None:
        if x2d.dtype != mxu_dtype:
            x2d = x2d.astype(mxu_dtype)
        if w1c.dtype != mxu_dtype:
            w1c = w1c.astype(mxu_dtype)
        if w2c.dtype != mxu_dtype:
            w2c = w2c.astype(mxu_dtype)

    if (Np, Dp) != (N, D):
        x2d = jnp.pad(x2d, ((0, Np - N), (0, Dp - D)))
    w1p = jnp.pad(w1c, ((0, Dp - D), (0, Hp - H))) if (Dp, Hp) != (D, H) else w1c
    b1p = (jnp.pad(b1, ((0, Hp - H),)) if Hp != H else b1).reshape(1, Hp)
    w2p = jnp.pad(w2c, ((0, Hp - H), (0, Dp - D))) if (Hp, Dp) != (H, D) else w2c
    b2p = (jnp.pad(b2, ((0, Dp - D),)) if Dp != D else b2).reshape(1, Dp)

    grid = (Np // rb, Hp // tk)

    need = budget(rb, tk)
    vmem_limit = int(min(max(need + (8 << 20), 32 << 20), int(0.90 * vmem_cap)))
    vmem_limit = int(min(max(vmem_limit, need + (2 << 20)), vmem_cap))

    # Advisory cost estimate so XLA schedules surrounding ops around the custom call.
    cost = pl.CostEstimate(
        flops=4 * Np * Dp * Hp,                  # two matmuls: 2 * (2*N*D*H)
        transcendentals=Np * Hp,                 # erf per hidden activation
        bytes_accessed=int(
            Np * Dp * (x_b + o_b)                                   # x in + out
            + grid[0] * (Dp * Hp + Hp + Hp * Dp + Dp) * w_b         # weights re-streamed per row block
        ),
    )

    kernel = functools.partial(_ffn_kernel, num_sub=num_sub, sub_k=sub_k)
    scratch_shapes = [pltpu.VMEM((rb, Dp), jnp.float32)] if use_acc_scratch else []

    out2d = pl.pallas_call(
        kernel,
        out_shape=jax.ShapeDtypeStruct((Np, Dp), out_dtype),
        grid_spec=pltpu.PrefetchScalarGridSpec(
            num_scalar_prefetch=0,
            grid=grid,
            in_specs=[
                pl.BlockSpec((rb, Dp), lambda i, k: (i, 0)),   # x rows (resident across k)
                pl.BlockSpec((Dp, tk), lambda i, k: (0, k)),   # w1 hidden slice
                pl.BlockSpec((1, tk), lambda i, k: (0, k)),    # b1 hidden slice
                pl.BlockSpec((tk, Dp), lambda i, k: (k, 0)),   # w2 hidden slice
                pl.BlockSpec((1, Dp), lambda i, k: (0, 0)),    # b2 (grid-invariant)
            ],
            out_specs=pl.BlockSpec((rb, Dp), lambda i, k: (i, 0)),  # resident accumulator across k
            scratch_shapes=scratch_shapes,
        ),
        compiler_params=pltpu.CompilerParams(
            dimension_semantics=("parallel", "arbitrary"),
            vmem_limit_bytes=vmem_limit,
        ),
        cost_estimate=cost,
    )(x2d, w1p, b1p, w2p, b2p)

    if (Np, Dp) != (N, D):
        out2d = out2d[:N, :D]
    return out2d.reshape(B, S, D)


def _reference(x, w1, b1, w2, b2):
    h = jnp.einsum("bsd,dh->bsh", x, w1) + b1
    g = jax.nn.gelu(h, approximate=False)
    return jnp.einsum("bsh,hd->bsd", g, w2) + b2


if __name__ == "__main__":
    # Module config: FeedForward(dim=32, mult=4, ff_dropout=0.0)
    dim, mult = 32, 4
    hidden = dim * mult
    B, S = 2, 8

    key = jax.random.PRNGKey(0)
    kx, k1, kb1, k2, kb2 = jax.random.split(key, 5)

    x = jax.random.normal(kx, (B, S, dim), dtype=jnp.float32)

    # Deterministic init mimicking nn.Linear's uniform(-1/sqrt(fan_in), 1/sqrt(fan_in)).
    lim1 = 1.0 / math.sqrt(dim)
    lim2 = 1.0 / math.sqrt(hidden)
    w1 = jax.random.uniform(k1, (dim, hidden), jnp.float32, -lim1, lim1)
    b1 = jax.random.uniform(kb1, (hidden,), jnp.float32, -lim1, lim1)
    w2 = jax.random.uniform(k2, (hidden, dim), jnp.float32, -lim2, lim2)
    b2 = jax.random.uniform(kb2, (dim,), jnp.float32, -lim2, lim2)

    out = feed_forward(x, w1, b1, w2, b2)
    out = jax.block_until_ready(out)

    ref = _reference(x, w1, b1, w2, b2)
    assert out.shape == x.shape
    assert jnp.allclose(out, ref, atol=1e-4, rtol=1e-4)

    print("KERNEL_OK")
</pallas_src>

<mosaic_0001>
module attributes {stable_mosaic.version = 11 : i64} {
  func.func @_ffn_kernel(%arg0: i32, %arg1: i32, %arg2: memref<16x128xf32, #tpu.memory_space<vmem>>, %arg3: memref<128x128xf32, #tpu.memory_space<vmem>>, %arg4: memref<1x128xf32, #tpu.memory_space<vmem>>, %arg5: memref<128x128xf32, #tpu.memory_space<vmem>>, %arg6: memref<1x128xf32, #tpu.memory_space<vmem>>, %arg7: memref<16x128xf32, #tpu.memory_space<vmem>>) attributes {dimension_semantics = [#tpu.dimension_semantics<parallel>, #tpu.dimension_semantics<arbitrary>], iteration_bounds = array<i64: 1, 1>, scalar_prefetch = 0 : i64, scratch_operands = 0 : i64, tpu.core_type = #tpu.core_type<tc>, window_params = [{transform_indices = @transform_0, window_bounds = array<i64: 16, 128>}, {transform_indices = @transform_1, window_bounds = array<i64: 128, 128>}, {transform_indices = @transform_2, window_bounds = array<i64: 1, 128>}, {transform_indices = @transform_3, window_bounds = array<i64: 128, 128>}, {pipeline_mode = #tpu.pipeline_mode<synchronous>, transform_indices = @transform_4, window_bounds = array<i64: 1, 128>}, {transform_indices = @transform_5, window_bounds = array<i64: 16, 128>}]} {
    %c0_i32 = arith.constant 0 : i32
    %0 = arith.cmpi eq, %arg1, %c0_i32 : i32
    %1 = arith.extui %0 : i1 to i32
    %c0_i32_0 = arith.constant 0 : i32
    %2 = arith.cmpi ne, %1, %c0_i32_0 : i32
    scf.if %2 {
      %cst_18 = arith.constant 0.000000e+00 : f32
      %25 = vector.broadcast %cst_18 : f32 to vector<16x128xf32>
      %c0_19 = arith.constant 0 : index
      %c0_20 = arith.constant 0 : index
      %26 = vector.load %arg7[%c0_19, %c0_20] : memref<16x128xf32, #tpu.memory_space<vmem>>, vector<16x128xf32>
      tpu.vector_store %arg7[%c0_19, %c0_20], %25 {strides = array<i32>} : memref<16x128xf32, #tpu.memory_space<vmem>>, vector<16x128xf32>,
    } else {
    }
    %c0 = arith.constant 0 : index
    %c0_1 = arith.constant 0 : index
    %3 = vector.load %arg2[%c0, %c0_1] : memref<16x128xf32, #tpu.memory_space<vmem>>, vector<16x128xf32>
    %c0_2 = arith.constant 0 : index
    %c0_3 = arith.constant 0 : index
    %4 = vector.load %arg3[%c0_2, %c0_3] : memref<128x128xf32, #tpu.memory_space<vmem>>, vector<128x128xf32>
    %cst = arith.constant dense<0.000000e+00> : vector<16x128xf32>
    %5 = tpu.matmul %3, %4, %cst {dimension_numbers = #tpu.dot_dimension_numbers<[1], [0], [0], [1], [0, 0, 1, 1], [], []>} : vector<16x128xf32>, vector<128x128xf32>, vector<16x128xf32> -> vector<16x128xf32>
    %c0_4 = arith.constant 0 : index
    %c0_5 = arith.constant 0 : index
    %6 = vector.load %arg4[%c0_4, %c0_5] : memref<1x128xf32, #tpu.memory_space<vmem>>, vector<1x128xf32>
    %7 = vector.broadcast %6 : vector<1x128xf32> to vector<16x128xf32>
    %8 = arith.addf %5, %7 : vector<16x128xf32>
    %cst_6 = arith.constant 5.000000e-01 : f32
    %9 = vector.broadcast %cst_6 : f32 to vector<16x128xf32>
    %10 = arith.mulf %9, %8 : vector<16x128xf32>
    %cst_7 = arith.constant 0.707106769 : f32
    %11 = vector.broadcast %cst_7 : f32 to vector<16x128xf32>
    %12 = arith.mulf %8, %11 : vector<16x128xf32>
    %13 = math.erf %12 : vector<16x128xf32>
    %cst_8 = arith.constant 1.000000e+00 : f32
    %14 = vector.broadcast %cst_8 : f32 to vector<16x128xf32>
    %15 = arith.addf %14, %13 : vector<16x128xf32>
    %16 = arith.mulf %10, %15 : vector<16x128xf32>
    %c0_9 = arith.constant 0 : index
    %c0_10 = arith.constant 0 : index
    %17 = vector.load %arg7[%c0_9, %c0_10] : memref<16x128xf32, #tpu.memory_space<vmem>>, vector<16x128xf32>
    %c0_11 = arith.constant 0 : index
    %c0_12 = arith.constant 0 : index
    %18 = vector.load %arg5[%c0_11, %c0_12] : memref<128x128xf32, #tpu.memory_space<vmem>>, vector<128x128xf32>
    %cst_13 = arith.constant dense<0.000000e+00> : vector<16x128xf32>
    %19 = tpu.matmul %16, %18, %cst_13 {dimension_numbers = #tpu.dot_dimension_numbers<[1], [0], [0], [1], [0, 0, 1, 1], [], []>} : vector<16x128xf32>, vector<128x128xf32>, vector<16x128xf32> -> vector<16x128xf32>
    %20 = arith.addf %17, %19 : vector<16x128xf32>
    %c0_14 = arith.constant 0 : index
    %c0_15 = arith.constant 0 : index
    %21 = vector.load %arg7[%c0_14, %c0_15] : memref<16x128xf32, #tpu.memory_space<vmem>>, vector<16x128xf32>
    tpu.vector_store %arg7[%c0_14, %c0_15], %20 {strides = array<i32>} : memref<16x128xf32, #tpu.memory_space<vmem>>, vector<16x128xf32>,
    %c0_i32_16 = arith.constant 0 : i32
    %22 = arith.cmpi eq, %arg1, %c0_i32_16 : i32
    %23 = arith.extui %22 : i1 to i32
    %c0_i32_17 = arith.constant 0 : i32
    %24 = arith.cmpi ne, %23, %c0_i32_17 : i32
    scf.if %24 {
      %c0_18 = arith.constant 0 : index
      %c0_19 = arith.constant 0 : index
      %25 = vector.load %arg7[%c0_18, %c0_19] : memref<16x128xf32, #tpu.memory_space<vmem>>, vector<16x128xf32>
      %c0_20 = arith.constant 0 : index
      %c0_21 = arith.constant 0 : index
      %26 = vector.load %arg6[%c0_20, %c0_21] : memref<1x128xf32, #tpu.memory_space<vmem>>, vector<1x128xf32>
      %27 = vector.broadcast %26 : vector<1x128xf32> to vector<16x128xf32>
      %28 = arith.addf %25, %27 : vector<16x128xf32>
      %c0_22 = arith.constant 0 : index
      %c0_23 = arith.constant 0 : index
      %29 = vector.load %arg7[%c0_22, %c0_23] : memref<16x128xf32, #tpu.memory_space<vmem>>, vector<16x128xf32>
      tpu.vector_store %arg7[%c0_22, %c0_23], %28 {strides = array<i32>} : memref<16x128xf32, #tpu.memory_space<vmem>>, vector<16x128xf32>,
    } else {
    }
    return
  }
  func.func @transform_0(%arg0: i32, %arg1: i32) -> (i32, i32) {
    %c0_i32 = arith.constant 0 : i32
    %c0_i32_0 = arith.constant 0 : i32
    return %arg0, %c0_i32 : i32, i32
  }
  func.func @transform_1(%arg0: i32, %arg1: i32) -> (i32, i32) {
    %c0_i32 = arith.constant 0 : i32
    %c0_i32_0 = arith.constant 0 : i32
    return %c0_i32, %arg1 : i32, i32
  }
  func.func @transform_2(%arg0: i32, %arg1: i32) -> (i32, i32) {
    %c0_i32 = arith.constant 0 : i32
    %c0_i32_0 = arith.constant 0 : i32
    return %c0_i32, %arg1 : i32, i32
  }
  func.func @transform_3(%arg0: i32, %arg1: i32) -> (i32, i32) {
    %c0_i32 = arith.constant 0 : i32
    %c0_i32_0 = arith.constant 0 : i32
    return %arg1, %c0_i32 : i32, i32
  }
  func.func @transform_4(%arg0: i32, %arg1: i32) -> (i32, i32) {
    %c0_i32 = arith.constant 0 : i32
    %c0_i32_0 = arith.constant 0 : i32
    %c0_i32_1 = arith.constant 0 : i32
    return %c0_i32, %c0_i32_0 : i32, i32
  }
  func.func @transform_5(%arg0: i32, %arg1: i32) -> (i32, i32) {
    %c0_i32 = arith.constant 0 : i32
    %c0_i32_0 = arith.constant 0 : i32
    return %arg0, %c0_i32 : i32, i32
  }
}

</mosaic_0001>

<bundles_post_ra>
// kernel: feed_forward.1
= control target key start
LH: loop header
LB: loop body
LE: loop exit
PB: predicated region body
PF: predicated region fallthrough
CT: control target
= control target key end

     0   :  { %s574_s1 = inlined_call_operand.vmem [shape: f32[128,128], index: 1, kind: input, shape index: {}]   ;;  %s575_s0 = inlined_call_operand.vmem [shape: f32[16,128], index: 0, kind: input, shape index: {}]   ;;  %s576_s3 = inlined_call_operand.vmem [shape: f32[128,128], index: 3, kind: input, shape index: {}]   ;;  %s577_s2 = inlined_call_operand.vmem [shape: f32[1,128], index: 2, kind: input, shape index: {}]   ;;  %s578_s4 = inlined_call_operand.vmem [shape: f32[1,128], index: 4, kind: input, shape index: {}]   ;;  %s579_s5 = inlined_call_operand.vmem [shape: f32[16,128], index: 5, kind: output, shape index: {}]  }
   0x1   :  { %v28_v0 = vld [vmem:[%s574_s1] sm:$0xff]  ;;  %v29_v1 = vld [vmem:[%s574_s1 + $0x8] sm:$0xff]  ;;  %v30_v2 = vld [vmem:[%s574_s1 + $0x10] sm:$0xff] }
   0x2   :  { %v361_v3 = vpack.c.bf16 %v29_v1, %v28_v0  ;;  %v31_v4 = vld [vmem:[%s574_s1 + $0x18] sm:$0xff]  ;;  %v32_v6 = vld [vmem:[%s574_s1 + $0x20] sm:$0xff]  ;;  %v33_v7 = vld [vmem:[%s574_s1 + $0x28] sm:$0xff] }
   0x3   :  { %v365_v5 = vpack.c.bf16 %v31_v4, %v30_v2  ;;  %v369_v8 = vpack.c.bf16 %v33_v7, %v32_v6  ;;  %v34_v9 = vld [vmem:[%s574_s1 + $0x30] sm:$0xff]  ;;  %v35_v10 = vld [vmem:[%s574_s1 + $0x38] sm:$0xff]  ;;  %v26_v11 = vld [vmem:[%s575_s0] sm:$0xff] }
   0x4   :  { %362 = vmatprep.subr.bf16.mxu0 %v361_v3  ;;  %323 = vmatprep.mubr.f32.mxu0 %v26_v11  ;;  %v138_v12 = vld [vmem:[%s576_s3] sm:$0xff]  ;;  %v139_v13 = vld [vmem:[%s576_s3 + $0x8] sm:$0xff]  ;;  %v140_v14 = vld [vmem:[%s576_s3 + $0x10] sm:$0xff]  ;;  %v373_v20 = vpack.c.bf16 %v35_v10, %v34_v9 }
   0x5   :  { %364 = vmatpush3.bf16.msra.mxu0 %v361_v3  ;;  %v393_v15 = vpack.c.bf16 %v139_v13, %v138_v12  ;;  %v141_v16 = vld [vmem:[%s576_s3 + $0x18] sm:$0xff]  ;;  %v142_v18 = vld [vmem:[%s576_s3 + $0x20] sm:$0xff]  ;;  %v143_v19 = vld [vmem:[%s576_s3 + $0x28] sm:$0xff] }
   0x6   :  { %366 = vmatprep.subr.bf16.mxu0 %v365_v5  ;;  %v397_v17 = vpack.c.bf16 %v141_v16, %v140_v14  ;;  %v36_v21 = vld [vmem:[%s574_s1 + $0x40] sm:$0xff]  ;;  %v37_v22 = vld [vmem:[%s574_s1 + $0x48] sm:$0xff]  ;;  %v401_v23 = vpack.c.bf16 %v143_v19, %v142_v18  ;;  %v38_v25 = vld [vmem:[%s574_s1 + $0x50] sm:$0xff] }
   0x7   :  { %394 = vmatprep.subr.bf16.mxu1 %v393_v15  ;;  %v377_v24 = vpack.c.bf16 %v37_v22, %v36_v21  ;;  %v39_v26 = vld [vmem:[%s574_s1 + $0x58] sm:$0xff]  ;;  %v40_v28 = vld [vmem:[%s574_s1 + $0x60] sm:$0xff]  ;;  %v41_v29 = vld [vmem:[%s574_s1 + $0x68] sm:$0xff] }
   0x8   :  { %396 = vmatpush3.bf16.msra.mxu1 %v393_v15  ;;  %v381_v27 = vpack.c.bf16 %v39_v26, %v38_v25  ;;  %v385_v30 = vpack.c.bf16 %v41_v29, %v40_v28  ;;  %v42_v31 = vld [vmem:[%s574_s1 + $0x70] sm:$0xff]  ;;  %v43_v32 = vld [vmem:[%s574_s1 + $0x78] sm:$0xff]  ;;  %v27_v34 = vld [vmem:[%s575_s0 + $0x8] sm:$0xff] }
   0x9   :  { %368 = vmatpush3.bf16.msra.mxu0 %v365_v5  ;;  %398 = vmatprep.subr.bf16.mxu1 %v397_v17  ;;  %v389_v33 = vpack.c.bf16 %v43_v32, %v42_v31  ;;  %v144_v35 = vld [vmem:[%s576_s3 + $0x30] sm:$0xff]  ;;  %v145_v36 = vld [vmem:[%s576_s3 + $0x38] sm:$0xff]  ;;  %v146_v38 = vld [vmem:[%s576_s3 + $0x40] sm:$0xff] }
   0xa   :  { %370 = vmatprep.subr.bf16.mxu0 %v369_v8  ;;  %v405_v37 = vpack.c.bf16 %v145_v36, %v144_v35  ;;  %v147_v39 = vld [vmem:[%s576_s3 + $0x48] sm:$0xff]  ;;  %v148_v41 = vld [vmem:[%s576_s3 + $0x50] sm:$0xff]  ;;  %v149_v42 = vld [vmem:[%s576_s3 + $0x58] sm:$0xff] }
   0xb   :  { %v409_v40 = vpack.c.bf16 %v147_v39, %v146_v38  ;;  %v413_v43 = vpack.c.bf16 %v149_v42, %v148_v41  ;;  %v150_v44 = vld [vmem:[%s576_s3 + $0x60] sm:$0xff]  ;;  %v151_v45 = vld [vmem:[%s576_s3 + $0x68] sm:$0xff]  ;;  %v152_v47 = vld [vmem:[%s576_s3 + $0x70] sm:$0xff] }
   0xc   :  { %400 = vmatpush3.bf16.msra.mxu1 %v397_v17  ;;  %v417_v46 = vpack.c.bf16 %v151_v45, %v150_v44  ;;  %v153_v48 = vld [vmem:[%s576_s3 + $0x78] sm:$0xff]  ;;  %v253_v50 = vld [vmem:[%s577_s2] ss:$0 sm:$0xff] }
   0xd   :  { %372 = vmatpush3.bf16.msra.mxu0 %v369_v8  ;;  %402 = vmatprep.subr.bf16.mxu1 %v401_v23  ;;  %v421_v49 = vpack.c.bf16 %v153_v48, %v152_v47  ;;  %v254_v2 = vld [vmem:[%s578_s4] ss:$0 sm:$0xff] }
   0xe   :  { %374 = vmatprep.subr.bf16.mxu0 %v373_v20 }
  0x10   :  { %404 = vmatpush3.bf16.msra.mxu1 %v401_v23 }
  0x11   :  { %376 = vmatpush3.bf16.msra.mxu0 %v373_v20  ;;  %406 = vmatprep.subr.bf16.mxu1 %v405_v37 }
  0x12   :  { %378 = vmatprep.subr.bf16.mxu0 %v377_v24 }
  0x14   :  { %408 = vmatpush3.bf16.msra.mxu1 %v405_v37 }
  0x15   :  { %380 = vmatpush3.bf16.msra.mxu0 %v377_v24  ;;  %410 = vmatprep.subr.bf16.mxu1 %v409_v40 }
  0x16   :  { %382 = vmatprep.subr.bf16.mxu0 %v381_v27 }
  0x18   :  { %412 = vmatpush3.bf16.msra.mxu1 %v409_v40 }
  0x19   :  { %384 = vmatpush3.bf16.msra.mxu0 %v381_v27  ;;  %414 = vmatprep.subr.bf16.mxu1 %v413_v43 }
  0x1a   :  { %386 = vmatprep.subr.bf16.mxu0 %v385_v30 }
  0x1c   :  { %416 = vmatpush3.bf16.msra.mxu1 %v413_v43 }
  0x1d   :  { %388 = vmatpush3.bf16.msra.mxu0 %v385_v30  ;;  %418 = vmatprep.subr.bf16.mxu1 %v417_v46 }
  0x1e   :  { %390 = vmatprep.subr.bf16.mxu0 %v389_v33 }
  0x20   :  { %420 = vmatpush3.bf16.msra.mxu1 %v417_v46 }
  0x21   :  { %392 = vmatpush3.bf16.msra.mxu0 %v389_v33  ;;  %422 = vmatprep.subr.bf16.mxu1 %v421_v49 }
  0x24   :  { %324 = vmatmul.mubr.f32.vlgmr.msra.gmra.mrb[0].mxu0 %v27_v34  ;;  %424 = vmatpush3.bf16.msra.mxu1 %v421_v49 }
  0xf7   :  { %v325_v51 = vpop.f32.mrb[0].mxu0 }
  0xf8   :  { %v123_v52 = vadd.f32 %v325_v51, %v253_v50  ;;  %v117_v53 = vpop.f32.mrb[1].mxu0 }
  0xf9   :  { %v118_v54 = vadd.f32 %v253_v50, %v117_v53 }
  0xfa   :  { %v129_v55 = vmul.f32 0.70710677, %v123_v52  ;;  %v127_v62 = vmul.f32 0.5, %v123_v52 }
  0xfb   :  { %v128_v56 = vmul.f32 0.70710677, %v118_v54  ;;  %v126_v60 = vmul.f32 0.5, %v118_v54 }
  0xfc   :  { %426 = verf.f32 %v129_v55 }
  0xfd   :  { %428 = verf.f32 %v128_v56 }
 0x106   :  { %v427_v57 = vpop.eup %426 }
 0x107   :  { %v429_v58 = vpop.eup %428  ;;  %v133_v59 = vadd.f32 1.0, %v427_v57 }
 0x108   :  { %v132_v61 = vadd.f32 1.0, %v429_v58 }
 0x109   :  { %v135_v0 = vmul.f32 %v133_v59, %v127_v62 }
 0x10a   :  { %v134_v63 = vmul.f32 %v132_v61, %v126_v60 }
 0x10c   :  { %358 = vmatprep.mubr.f32.mxu1 %v134_v63 }
 0x10d   :  { %359 = vmatmul.mubr.f32.vlgmr.msra.gmra.mrb[0].mxu1 %v135_v0 }
 0x1e0   :  { %v360_v1 = vpop.f32.mrb[0].mxu1 }
 0x1e1   :  { %v220_v3 = vpop.f32.mrb[1].mxu1  ;;  %v246_v4 = vadd.f32 %v360_v1, %v254_v2 }
 0x1e2   :  { %v245_v5 = vadd.f32 %v254_v2, %v220_v3 }
 0x1e3   :  { %248 = vst [vmem:[%s579_s5 + $0x8] sm:$0xff] %v246_v4 }
 0x1e4   :  { %247 = vst [vmem:[%s579_s5] sm:$0xff] %v245_v5 }

</bundles_post_ra>
